<compile_context>
chip_gen: v7x
topology: tpu7x:2x2x1
jax: 0.10.0
libtpu: 0.0.40
codegen_flags: <defaults>
</compile_context>

<pallas_src>
import jax
import jax.numpy as jnp
from jax.experimental import pallas as pl
from jax.experimental.pallas import tpu as pltpu


def _round_up(n, m):
    return ((n + m - 1) // m) * m


# ---------------------------------------------------------------------------
# Kernels
# ---------------------------------------------------------------------------
def _fused_kernel(x_ref, w_ref, b_ref, o_ref):
    # Single MXU matmul (fused W = W0 @ W1), f32 accumulation, f32 bias add,
    # cast only at the final store (v5e-safe: no bf16 VPU arithmetic).
    y = jnp.dot(x_ref[...], w_ref[...], preferred_element_type=jnp.float32)
    o_ref[...] = (y + b_ref[...]).astype(o_ref.dtype)


def _two_matmul_kernel(x_ref, w0_ref, b0_ref, w1_ref, b1_ref, o_ref):
    # l0: x @ W0 + b0
    h = jnp.dot(x_ref[...], w0_ref[...], preferred_element_type=jnp.float32)
    h = h + b0_ref[...]                      # (1, H) broadcasts over batch rows
    # dropout -> identity (eval mode)
    # l1: h @ W1 + b1  (keep h in f32; no lossy downcast between layers)
    y = jnp.dot(h, w1_ref[...], preferred_element_type=jnp.float32)
    o_ref[...] = (y + b1_ref[...]).astype(o_ref.dtype)


# ---------------------------------------------------------------------------
# Wrapper
# ---------------------------------------------------------------------------
def custom2_linear_head(x, w0, b0, w1, b1, *, block_b=8192, fuse=True):
    """Forward pass of Custom2LinearHead (eval mode).

    x : (B, in)                  activations
    w0: (in, H),  b0: (1, H)     first Linear, weights pre-transposed
    w1: (H, out), b1: (1, out)   second Linear, weights pre-transposed
    Returns (B, out).
    """
    B, in_features = x.shape
    hidden = w0.shape[1]
    out_features = w1.shape[1]
    itemsize = jnp.dtype(x.dtype).itemsize

    # Batch tile: multiple of 8 (f32 sublane packing). Cap it so the grid has
    # >= ~4 steps when B is large (keeps both v7x TensorCores busy via the
    # "parallel" batch axis) but never exceed block_b, and never exceed the
    # (sublane-rounded) batch itself. Ragged last block is masked by Pallas,
    # so no wrapper-side padding / extra HBM pass over x is needed.
    tb = min(block_b, max(8, _round_up(pl.cdiv(B, 4), 8)))
    tb = min(tb, _round_up(B, 8))
    grid = (pl.cdiv(B, tb),)

    compiler_params = pltpu.CompilerParams(
        dimension_semantics=("parallel",))   # no cross-iteration accumulator

    out_shape = jax.ShapeDtypeStruct((B, out_features), x.dtype)
    out_spec = pl.BlockSpec((tb, out_features), lambda i: (i, 0))

    if fuse:
        # Eval-mode exact fusion: (x@W0 + b0)@W1 + b1 == x@(W0@W1) + (b0@W1 + b1)
        w = jnp.dot(w0.astype(jnp.float32), w1.astype(jnp.float32)).astype(x.dtype)
        b = (jnp.dot(b0.astype(jnp.float32), w1.astype(jnp.float32))
             + b1.astype(jnp.float32))

        flops = 2 * B * in_features * out_features
        bytes_accessed = (itemsize * (x.size + w.size + B * out_features)
                          + 4 * b.size)

        out = pl.pallas_call(
            _fused_kernel,
            out_shape=out_shape,
            grid_spec=pltpu.PrefetchScalarGridSpec(
                num_scalar_prefetch=0,
                grid=grid,
                in_specs=[
                    pl.BlockSpec((tb, in_features), lambda i: (i, 0)),          # streamed
                    pl.BlockSpec((in_features, out_features), lambda i: (0, 0)),  # resident
                    pl.BlockSpec((1, out_features), lambda i: (0, 0)),            # resident
                ],
                out_specs=out_spec,
            ),
            compiler_params=compiler_params,
            cost_estimate=pl.CostEstimate(
                flops=flops, transcendentals=0, bytes_accessed=bytes_accessed),
        )(x, w, b)
    else:
        # Structural two-matmul path (layer-by-layer, dropout == identity).
        w0c = w0.astype(x.dtype)
        b0f = b0.astype(jnp.float32)
        w1c = w1.astype(x.dtype)
        b1f = b1.astype(jnp.float32)

        flops = 2 * B * (in_features * hidden + hidden * out_features)
        bytes_accessed = (itemsize * (x.size + w0c.size + w1c.size
                                      + B * out_features)
                          + 4 * (b0f.size + b1f.size))

        out = pl.pallas_call(
            _two_matmul_kernel,
            out_shape=out_shape,
            grid_spec=pltpu.PrefetchScalarGridSpec(
                num_scalar_prefetch=0,
                grid=grid,
                in_specs=[
                    pl.BlockSpec((tb, in_features), lambda i: (i, 0)),          # streamed
                    pl.BlockSpec((in_features, hidden), lambda i: (0, 0)),      # resident
                    pl.BlockSpec((1, hidden), lambda i: (0, 0)),                # resident
                    pl.BlockSpec((hidden, out_features), lambda i: (0, 0)),     # resident
                    pl.BlockSpec((1, out_features), lambda i: (0, 0)),          # resident
                ],
                out_specs=out_spec,
            ),
            compiler_params=compiler_params,
            cost_estimate=pl.CostEstimate(
                flops=flops, transcendentals=0, bytes_accessed=bytes_accessed),
        )(x, w0c, b0f, w1c, b1f)

    return out


# ---------------------------------------------------------------------------
# Demo / correctness check
# ---------------------------------------------------------------------------
if __name__ == "__main__":
    # Shapes consistent with the module: in_features=32, hidden_size=64, out_features=16
    batch, in_features, hidden_size, out_features = 8, 32, 64, 16

    key = jax.random.PRNGKey(0)
    kx, k0w, k0b, k1w, k1b = jax.random.split(key, 5)

    # Deterministic parameter init (PyTorch-Linear-like uniform bounds).
    bound0 = 1.0 / jnp.sqrt(in_features)
    bound1 = 1.0 / jnp.sqrt(hidden_size)
    x  = jax.random.normal(kx, (batch, in_features), dtype=jnp.float32)
    w0 = jax.random.uniform(k0w, (in_features, hidden_size), jnp.float32, -bound0, bound0)
    b0 = jax.random.uniform(k0b, (1, hidden_size),            jnp.float32, -bound0, bound0)
    w1 = jax.random.uniform(k1w, (hidden_size, out_features), jnp.float32, -bound1, bound1)
    b1 = jax.random.uniform(k1b, (1, out_features),           jnp.float32, -bound1, bound1)

    # Pure-JAX reference (eval mode: dropout == identity).
    ref = (x @ w0 + b0) @ w1 + b1

    # Fused (default, eval-mode production) path.
    out_fused = jax.block_until_ready(custom2_linear_head(x, w0, b0, w1, b1, fuse=True))
    assert out_fused.shape == (batch, out_features)
    assert jnp.allclose(out_fused, ref, atol=1e-4, rtol=1e-4), "fused path mismatch"

    # Structural two-matmul path.
    out_two = jax.block_until_ready(custom2_linear_head(x, w0, b0, w1, b1, fuse=False))
    assert out_two.shape == (batch, out_features)
    assert jnp.allclose(out_two, ref, atol=1e-5, rtol=1e-5), "two-matmul path mismatch"

    # Ragged-batch path (B not a multiple of the tile, exercises masked blocks).
    batch2 = 37
    x2 = jax.random.normal(kx, (batch2, in_features), dtype=jnp.float32)
    ref2 = (x2 @ w0 + b0) @ w1 + b1
    out2 = jax.block_until_ready(
        custom2_linear_head(x2, w0, b0, w1, b1, block_b=16, fuse=True))
    assert out2.shape == (batch2, out_features)
    assert jnp.allclose(out2, ref2, atol=1e-4, rtol=1e-4), "ragged batch mismatch"

    print("KERNEL_OK")
</pallas_src>

<mosaic_0001>
module attributes {stable_mosaic.version = 11 : i64} {
  func.func @_fused_kernel(%arg0: i32, %arg1: memref<8x32xf32, #tpu.memory_space<vmem>>, %arg2: memref<32x16xf32, #tpu.memory_space<vmem>>, %arg3: memref<1x16xf32, #tpu.memory_space<vmem>>, %arg4: memref<8x16xf32, #tpu.memory_space<vmem>>) attributes {dimension_semantics = [#tpu.dimension_semantics<parallel>], iteration_bounds = array<i64: 1>, scalar_prefetch = 0 : i64, scratch_operands = 0 : i64, tpu.core_type = #tpu.core_type<tc>, window_params = [{transform_indices = @transform_0, window_bounds = array<i64: 8, 32>}, {pipeline_mode = #tpu.pipeline_mode<synchronous>, transform_indices = @transform_1, window_bounds = array<i64: 32, 16>}, {pipeline_mode = #tpu.pipeline_mode<synchronous>, transform_indices = @transform_2, window_bounds = array<i64: 1, 16>}, {transform_indices = @transform_3, window_bounds = array<i64: 8, 16>}]} {
    %c0 = arith.constant 0 : index
    %c0_0 = arith.constant 0 : index
    %0 = vector.load %arg1[%c0, %c0_0] : memref<8x32xf32, #tpu.memory_space<vmem>>, vector<8x32xf32>
    %c0_1 = arith.constant 0 : index
    %c0_2 = arith.constant 0 : index
    %1 = vector.load %arg2[%c0_1, %c0_2] : memref<32x16xf32, #tpu.memory_space<vmem>>, vector<32x16xf32>
    %cst = arith.constant dense<0.000000e+00> : vector<8x16xf32>
    %2 = tpu.matmul %0, %1, %cst {dimension_numbers = #tpu.dot_dimension_numbers<[1], [0], [0], [1], [0, 0, 1, 1], [], []>} : vector<8x32xf32>, vector<32x16xf32>, vector<8x16xf32> -> vector<8x16xf32>
    %c0_3 = arith.constant 0 : index
    %c0_4 = arith.constant 0 : index
    %3 = vector.load %arg3[%c0_3, %c0_4] : memref<1x16xf32, #tpu.memory_space<vmem>>, vector<1x16xf32>
    %4 = vector.broadcast %3 : vector<1x16xf32> to vector<8x16xf32>
    %5 = arith.addf %2, %4 : vector<8x16xf32>
    %c0_5 = arith.constant 0 : index
    %c0_6 = arith.constant 0 : index
    %6 = vector.load %arg4[%c0_5, %c0_6] : memref<8x16xf32, #tpu.memory_space<vmem>>, vector<8x16xf32>
    tpu.vector_store %arg4[%c0_5, %c0_6], %5 {strides = array<i32>} : memref<8x16xf32, #tpu.memory_space<vmem>>, vector<8x16xf32>,
    return
  }
  func.func @transform_0(%arg0: i32) -> (i32, i32) {
    %c0_i32 = arith.constant 0 : i32
    %c0_i32_0 = arith.constant 0 : i32
    return %arg0, %c0_i32 : i32, i32
  }
  func.func @transform_1(%arg0: i32) -> (i32, i32) {
    %c0_i32 = arith.constant 0 : i32
    %c0_i32_0 = arith.constant 0 : i32
    %c0_i32_1 = arith.constant 0 : i32
    return %c0_i32, %c0_i32_0 : i32, i32
  }
  func.func @transform_2(%arg0: i32) -> (i32, i32) {
    %c0_i32 = arith.constant 0 : i32
    %c0_i32_0 = arith.constant 0 : i32
    %c0_i32_1 = arith.constant 0 : i32
    return %c0_i32, %c0_i32_0 : i32, i32
  }
  func.func @transform_3(%arg0: i32) -> (i32, i32) {
    %c0_i32 = arith.constant 0 : i32
    %c0_i32_0 = arith.constant 0 : i32
    return %arg0, %c0_i32 : i32, i32
  }
}

</mosaic_0001>

<bundles_post_ra>
// kernel: tpu_custom_call.1
= control target key start
LH: loop header
LB: loop body
LE: loop exit
PB: predicated region body
PF: predicated region fallthrough
CT: control target
= control target key end

     0   :  { %v169_v3 = vmov 0.0|0.0   ;;  %vm170_vm0 = vmmov 0   ;;  %v171_v6 = vmov 0.0   ;;  %s223_s0 = inlined_call_operand.vmem [shape: f32[8,32], index: 0, kind: input, shape index: {}]   ;;  %s224_s1 = inlined_call_operand.vmem [shape: f32[32,16], index: 1, kind: input, shape index: {}]   ;;  %s225_s2 = inlined_call_operand.vmem [shape: f32[1,16], index: 2, kind: input, shape index: {}]   ;;  %s226_s3 = inlined_call_operand.hbm [shape: f32[8,16], index: 3, kind: output, shape index: {}]  }
   0x1   :  { %v16_v0 = vld [vmem:[%s224_s1] sm:$0xff]  ;;  %v17_v1 = vld [vmem:[%s224_s1 + $0x8] sm:$0xff]  ;;  %v18_v2 = vld [vmem:[%s224_s1 + $0x10] sm:$0xff]  ;;  %135 = vmatprep.subr.bf16.mxu0 %v169_v3  ;;  %132 = vmatprep.mubr.msk.f32.mxu0 %vm170_vm0, %v171_v6 }
   0x2   :  { %v136_v4 = vpack.c.bf16 %v17_v1, %v16_v0  ;;  %v19_v5 = vld [vmem:[%s224_s1 + $0x18] sm:$0xff] }
   0x3   :  { %8 = vsyncpa [#allocation3], 0  ;;  %v139_v7 = vpack.c.bf16 %v19_v5, %v18_v2  ;;  %v15_v8 = vld [vmem:[%s223_s0] sm:$0xff]  ;;  %vm27_vm1 = vcmask 261120   ;;  %s172_s24 = smov [#allocation2]   ;;  %vm101_vm2 = vcmask 130048  }
   0x4   :  { %137 = vmatpush3.bf16.msra.mxu0 %v136_v4  ;;  %v117_v9 = vld [vmem:[%s225_s2] ss:$0 sm:$0xff]  ;;  %s109_s1 = sshll.u32 %s172_s24, 4  ;;  %s110_s1 = int_to_ptr.vmem [resolvable:$true] %s109_s1 }
   0x5   :  { %138 = vmatprep.subr.bf16.mxu0 %v169_v3  ;;  %s145_s25 = scalar_lea.vmem %s110_s1, 128  ;;  %p150_p1 = scmp.lt.s32.totalorder %s110_s1, %s110_s1 }
   0x6   :  { %p146_p0 = scmp.ne.s32.totalorder %s110_s1, %s145_s25  ;;  %p151_p2 = scmp.lt.s32.totalorder %s145_s25, %s145_s25 }
   0x8   :  { %140 = vmatpush3.bf16.msra.mxu0 %v139_v7  ;;  %p152_p3 = por %p151_p2, %p150_p1 }
   0xa   :  { %p153_p4 = pnand %p152_p3, %p146_p0 }
   0xb   :  { %133 = vmatmul.mubr.msk.f32.vlgmr.msra.gmra.mrb[0].mxu0 %vm27_vm1, %v15_v8 }
  0xde   :  { %v97_v10 = vpop.f32.mrb[0].mxu0 }
  0xdf   :  { %v98_v11 = vadd.f32 %v117_v9, %v97_v10  ;;  %v134_v12 = vpop.f32.mrb[1].mxu0 }
  0xe1   :  { %102 = vst.msk [vmem:[#allocation2] sm:$0xff] %vm101_vm2, %v98_v11 }
  0xe2   :  { %156 = shalt.err (!%p153_p4)
}
  0xe3   :  { %s157_s27 = scalar_lea.hbm %s226_s3, 128 }
  0xe4   :  { %p158_p5 = scmp.ne.s32.totalorder %s226_s3, %s157_s27  ;;  %p161_p6 = scmp.lt.u32.totalorder %s157_s27, %s226_s3 }
  0xe6   :  { %p163_p7 = pnand %p161_p6, %p158_p5 }
  0xe8   :  { %166 = shalt.err (!%p163_p7)
}
  0xe9   :  { %112 = dma.vmem_to_hbm [thread:$0]  %s110_s1, 128, %s226_s3, [#allocation3]  }
  0xea   :  { %167 = dma.done.wait [#allocation3], 128  }
  0xeb   :  { %168 = vsyncadd [#allocation3], 4294967168 }
  0xec   :  { %116 = vsyncpa [#allocation3], 1 }

</bundles_post_ra>
